<compile_context>
chip_gen: v5e
topology: v5e:2x2
jax: 0.10.0
libtpu: 0.0.40
codegen_flags: <defaults>
</compile_context>

<pallas_src>
import jax
import jax.numpy as jnp
from jax import lax
from jax.experimental import pallas as pl
from jax.experimental.pallas import tpu as pltpu

# ---- Model hyper-parameters (mirror the PyTorch script) --------------------
ACTIVATIONS = ['sigmoid', 'sigmoid', 'sigmoid', 'linear']
NODES_PER_LAYER = [10, 5, 2]
HIDDEN_LAYERS = 3
INPUT_SIZE = 4
OUTPUT_SIZE = 1
DIMS = [INPUT_SIZE] + NODES_PER_LAYER[:HIDDEN_LAYERS] + [OUTPUT_SIZE]  # [4,10,5,2,1]

# Row offset of each layer's [W^T | b] block inside the packed parameter slab.
# Each layer block starts on an 8-row boundary so slab slices stay sublane-tile
# aligned (offsets 0, 16, 24, 32; PACK_ROWS = 40).
_ROW_OFFS = []
_r = 0
for _fout in DIMS[1:]:
    _ROW_OFFS.append(_r)
    _r = ((_r + _fout + 7) // 8) * 8
PACK_ROWS = _r                     # 40 rows  (8-aligned layer blocks)
PACK_COLS = max(DIMS[:-1]) + 1     # 11 cols  (widest fan-in + 1 bias column)

_LANE = 128
_VMEM_LIMIT_BYTES = 48 * 1024 * 1024    # explicit limit; safely under v7x's 64 MiB physical VMEM
_VMEM_BUDGET_BYTES = 40 * 1024 * 1024   # target used when picking the batch tile


def simple_nn_kernel(p_ref, x_ref, out_ref):
    """Fused forward for one batch tile.

    p_ref:   (PACK_ROWS, PACK_COLS) packed [W^T | b] slab, VMEM-resident across the grid.
    x_ref:   (TB, INPUT_SIZE)  batch-major input tile (exactly as stored in HBM).
    out_ref: (OUTPUT_SIZE, TB) feature-major output tile (batch on the 128-lane axis).
    """
    x = x_ref[...]
    h = None
    for li in range(len(DIMS) - 1):
        fin, fout, r0 = DIMS[li], DIMS[li + 1], _ROW_OFFS[li]
        w = p_ref[r0:r0 + fout, 0:fin]          # (fout, fin)  transposed weight
        b = p_ref[r0:r0 + fout, fin:fin + 1]    # (fout, 1)    bias column
        if li == 0:
            # Fold the batch-major -> feature-major layout flip into the first
            # matmul: contract on x's last (feature) dim, giving (fout, TB)
            # directly with the batch riding the lane axis.
            z = lax.dot_general(w, x, (((1,), (1,)), ((), ())),
                                preferred_element_type=jnp.float32) + b
        else:
            z = jnp.dot(w, h, preferred_element_type=jnp.float32) + b
        act = ACTIVATIONS[li]
        if act == 'sigmoid':
            # Exact sigmoid with a single EUP op per element.
            h = 0.5 * jnp.tanh(0.5 * z) + 0.5
        elif act == 'relu':
            h = jnp.maximum(z, 0.0)
        else:                                   # 'linear'
            h = z
    out_ref[...] = h.astype(out_ref.dtype)


def _round_up(n, m):
    return ((n + m - 1) // m) * m


def _cdiv(a, b):
    return (a + b - 1) // b


def _vmem_bytes_estimate(tb):
    """Conservative per-call VMEM estimate for a batch tile of size tb."""
    x_io = 2 * tb * _LANE * 4        # (tb, 4) blocks pad the minor dim to 128 lanes; double-buffered
    x_live = 2 * tb * _LANE * 4      # head-room for the in-kernel relayout of the same block
    out_io = 2 * 8 * tb * 4          # (1, tb) blocks pad sublanes 1 -> 8; double-buffered
    acts = 4 * 48 * tb               # feature-major f32 activations (sublane-padded)
    params = 2 * PACK_ROWS * _LANE * 4
    return x_io + x_live + out_io + acts + params


def _pick_tile(batch, block_b):
    block_b = max(_LANE, (block_b // _LANE) * _LANE)     # keep TB lane-aligned
    tb = min(block_b, _round_up(batch, _LANE))
    # (a) Stay inside the VMEM budget (v7x has only 64 MiB physical VMEM).
    while tb > _LANE and _vmem_bytes_estimate(tb) > _VMEM_BUDGET_BYTES:
        tb = max(_LANE, (tb // 2) // _LANE * _LANE)
    # (b) Prefer >=2 grid steps so v7x's two TensorCores both get work
    #     (harmless no-op on single-core v5e/v6e).
    if batch > _LANE and _cdiv(batch, tb) < 2:
        tb = max(_LANE, _round_up(_cdiv(batch, 2), _LANE))
    return tb


def simple_nn_forward(x, packed_params, block_b=32768):
    """x: (B, INPUT_SIZE) f32, packed_params: (PACK_ROWS, PACK_COLS) f32.

    Returns (B, OUTPUT_SIZE) f32 with identical semantics to the PyTorch module.
    """
    B = x.shape[0]
    TB = _pick_tile(B, block_b)
    B_pad = _round_up(B, TB)

    x_p = x.astype(jnp.float32)
    if B_pad != B:
        # Only the ragged tail needs padding; no transpose pass anywhere.
        x_p = jnp.pad(x_p, ((0, B_pad - B), (0, 0)))

    out_t = pl.pallas_call(
        simple_nn_kernel,
        out_shape=jax.ShapeDtypeStruct((OUTPUT_SIZE, B_pad), jnp.float32),
        grid=(B_pad // TB,),
        in_specs=[
            # Parameter slab: same block every step -> DMA'd once, stays VMEM-resident.
            pl.BlockSpec((PACK_ROWS, PACK_COLS), lambda i: (0, 0)),
            # Per-step batch-major input tile (no wrapper-side transpose).
            pl.BlockSpec((TB, INPUT_SIZE), lambda i: (i, 0)),
        ],
        # Lane-dense (1, TB) output blocks -> unmasked stores.
        out_specs=pl.BlockSpec((OUTPUT_SIZE, TB), lambda i: (0, i)),
        compiler_params=pltpu.CompilerParams(
            dimension_semantics=("parallel",),          # megacore sharding on v7x
            vmem_limit_bytes=_VMEM_LIMIT_BYTES,
        ),
    )(packed_params, x_p)

    # (1, B_pad) -> (B, 1): row slice + reshape, no transpose copy.
    return out_t[0, :B][:, None]


def init_params(key):
    """Deterministic init with nn.Linear-like uniform bounds (W stored [in, out])."""
    params = []
    for i in range(len(DIMS) - 1):
        fan_in, fan_out = DIMS[i], DIMS[i + 1]
        key, kw, kb = jax.random.split(key, 3)
        bound = 1.0 / (fan_in ** 0.5)
        w = jax.random.uniform(kw, (fan_in, fan_out), jnp.float32, -bound, bound)
        b = jax.random.uniform(kb, (fan_out,), jnp.float32, -bound, bound)
        params.append((w, b))
    return params


def pack_params(params):
    """Pack all layers' [W^T | b] into one (PACK_ROWS, PACK_COLS) f32 slab."""
    slab = jnp.zeros((PACK_ROWS, PACK_COLS), jnp.float32)
    for (w, b), r0 in zip(params, _ROW_OFFS):
        fin, fout = w.shape
        slab = slab.at[r0:r0 + fout, 0:fin].set(w.T)
        slab = slab.at[r0:r0 + fout, fin].set(b)
    return slab


def reference_forward(x, params):
    """Pure-JAX reference matching the PyTorch nn.Sequential exactly."""
    h = x
    n = len(params)
    for i, (w, b) in enumerate(params):
        h = h @ w + b
        if i < n - 1:
            if ACTIVATIONS[i] == 'sigmoid':
                h = jax.nn.sigmoid(h)
            elif ACTIVATIONS[i] == 'relu':
                h = jax.nn.relu(h)
    return h


if __name__ == "__main__":
    key = jax.random.PRNGKey(0)
    key, kx = jax.random.split(key)

    params = init_params(key)
    packed = pack_params(params)

    # Small shape consistent with the module: batch=8 rows of 4 features.
    x = jax.random.normal(kx, (8, INPUT_SIZE), jnp.float32)
    out = jax.block_until_ready(simple_nn_forward(x, packed))
    ref = reference_forward(x, params)
    assert out.shape == (8, OUTPUT_SIZE)
    # Exact (tanh-based) sigmoid -> tighter tolerance than the approx-recip version.
    assert jnp.allclose(out, ref, atol=1e-3, rtol=1e-3), "mismatch (small batch)"

    # Larger, non-tile-multiple batch: exercises >=2 grid steps, batch padding
    # and the resident-parameter path.
    key, kx2 = jax.random.split(key)
    x_big = jax.random.normal(kx2, (2000, INPUT_SIZE), jnp.float32)
    out_big = jax.block_until_ready(simple_nn_forward(x_big, packed))
    ref_big = reference_forward(x_big, params)
    assert out_big.shape == (2000, OUTPUT_SIZE)
    assert jnp.allclose(out_big, ref_big, atol=1e-3, rtol=1e-3), "mismatch (gridded batch)"

    print("KERNEL_OK")
</pallas_src>

<mosaic_0001>
module attributes {stable_mosaic.version = 11 : i64} {
  func.func @simple_nn_kernel(%arg0: i32, %arg1: memref<40x11xf32, #tpu.memory_space<vmem>>, %arg2: memref<128x4xf32, #tpu.memory_space<vmem>>, %arg3: memref<1x128xf32, #tpu.memory_space<vmem>>) attributes {dimension_semantics = [#tpu.dimension_semantics<parallel>], iteration_bounds = array<i64: 1>, scalar_prefetch = 0 : i64, scratch_operands = 0 : i64, tpu.core_type = #tpu.core_type<tc>, window_params = [{pipeline_mode = #tpu.pipeline_mode<synchronous>, transform_indices = @transform_0, window_bounds = array<i64: 40, 11>}, {transform_indices = @transform_1, window_bounds = array<i64: 128, 4>}, {transform_indices = @transform_2, window_bounds = array<i64: 1, 128>}]} {
    %c0 = arith.constant 0 : index
    %c0_0 = arith.constant 0 : index
    %0 = vector.load %arg2[%c0, %c0_0] : memref<128x4xf32, #tpu.memory_space<vmem>>, vector<128x4xf32>
    %c0_1 = arith.constant 0 : index
    %c0_2 = arith.constant 0 : index
    %1 = vector.load %arg1[%c0_1, %c0_2] : memref<40x11xf32, #tpu.memory_space<vmem>>, vector<10x4xf32>
    %c0_3 = arith.constant 0 : index
    %c4 = arith.constant 4 : index
    %2 = vector.load %arg1[%c0_3, %c4] : memref<40x11xf32, #tpu.memory_space<vmem>>, vector<10x1xf32>
    %cst = arith.constant dense<0.000000e+00> : vector<10x128xf32>
    %3 = tpu.matmul %1, %0, %cst {dimension_numbers = #tpu.dot_dimension_numbers<[1], [1], [0], [0], [0, 0, 1, 0], [], []>} : vector<10x4xf32>, vector<128x4xf32>, vector<10x128xf32> -> vector<10x128xf32>
    %4 = vector.broadcast %2 : vector<10x1xf32> to vector<10x128xf32>
    %5 = arith.addf %3, %4 : vector<10x128xf32>
    %cst_4 = arith.constant 5.000000e-01 : f32
    %6 = vector.broadcast %cst_4 : f32 to vector<10x128xf32>
    %7 = arith.mulf %6, %5 : vector<10x128xf32>
    %8 = math.tanh %7 : vector<10x128xf32>
    %cst_5 = arith.constant 5.000000e-01 : f32
    %9 = vector.broadcast %cst_5 : f32 to vector<10x128xf32>
    %10 = arith.mulf %9, %8 : vector<10x128xf32>
    %cst_6 = arith.constant 5.000000e-01 : f32
    %11 = vector.broadcast %cst_6 : f32 to vector<10x128xf32>
    %12 = arith.addf %10, %11 : vector<10x128xf32>
    %c16 = arith.constant 16 : index
    %c0_7 = arith.constant 0 : index
    %13 = vector.load %arg1[%c16, %c0_7] : memref<40x11xf32, #tpu.memory_space<vmem>>, vector<5x10xf32>
    %c16_8 = arith.constant 16 : index
    %c10 = arith.constant 10 : index
    %14 = vector.load %arg1[%c16_8, %c10] : memref<40x11xf32, #tpu.memory_space<vmem>>, vector<5x1xf32>
    %cst_9 = arith.constant dense<0.000000e+00> : vector<5x128xf32>
    %15 = tpu.matmul %13, %12, %cst_9 {dimension_numbers = #tpu.dot_dimension_numbers<[1], [0], [0], [1], [0, 0, 1, 1], [], []>} : vector<5x10xf32>, vector<10x128xf32>, vector<5x128xf32> -> vector<5x128xf32>
    %16 = vector.broadcast %14 : vector<5x1xf32> to vector<5x128xf32>
    %17 = arith.addf %15, %16 : vector<5x128xf32>
    %cst_10 = arith.constant 5.000000e-01 : f32
    %18 = vector.broadcast %cst_10 : f32 to vector<5x128xf32>
    %19 = arith.mulf %18, %17 : vector<5x128xf32>
    %20 = math.tanh %19 : vector<5x128xf32>
    %cst_11 = arith.constant 5.000000e-01 : f32
    %21 = vector.broadcast %cst_11 : f32 to vector<5x128xf32>
    %22 = arith.mulf %21, %20 : vector<5x128xf32>
    %cst_12 = arith.constant 5.000000e-01 : f32
    %23 = vector.broadcast %cst_12 : f32 to vector<5x128xf32>
    %24 = arith.addf %22, %23 : vector<5x128xf32>
    %c24 = arith.constant 24 : index
    %c0_13 = arith.constant 0 : index
    %25 = vector.load %arg1[%c24, %c0_13] : memref<40x11xf32, #tpu.memory_space<vmem>>, vector<2x5xf32>
    %c24_14 = arith.constant 24 : index
    %c5 = arith.constant 5 : index
    %26 = vector.load %arg1[%c24_14, %c5] : memref<40x11xf32, #tpu.memory_space<vmem>>, vector<2x1xf32>
    %cst_15 = arith.constant dense<0.000000e+00> : vector<2x128xf32>
    %27 = tpu.matmul %25, %24, %cst_15 {dimension_numbers = #tpu.dot_dimension_numbers<[1], [0], [0], [1], [0, 0, 1, 1], [], []>} : vector<2x5xf32>, vector<5x128xf32>, vector<2x128xf32> -> vector<2x128xf32>
    %28 = vector.broadcast %26 : vector<2x1xf32> to vector<2x128xf32>
    %29 = arith.addf %27, %28 : vector<2x128xf32>
    %cst_16 = arith.constant 5.000000e-01 : f32
    %30 = vector.broadcast %cst_16 : f32 to vector<2x128xf32>
    %31 = arith.mulf %30, %29 : vector<2x128xf32>
    %32 = math.tanh %31 : vector<2x128xf32>
    %cst_17 = arith.constant 5.000000e-01 : f32
    %33 = vector.broadcast %cst_17 : f32 to vector<2x128xf32>
    %34 = arith.mulf %33, %32 : vector<2x128xf32>
    %cst_18 = arith.constant 5.000000e-01 : f32
    %35 = vector.broadcast %cst_18 : f32 to vector<2x128xf32>
    %36 = arith.addf %34, %35 : vector<2x128xf32>
    %c32 = arith.constant 32 : index
    %c0_19 = arith.constant 0 : index
    %37 = vector.load %arg1[%c32, %c0_19] : memref<40x11xf32, #tpu.memory_space<vmem>>, vector<1x2xf32>
    %c32_20 = arith.constant 32 : index
    %c2 = arith.constant 2 : index
    %38 = vector.load %arg1[%c32_20, %c2] : memref<40x11xf32, #tpu.memory_space<vmem>>, vector<1x1xf32>
    %cst_21 = arith.constant dense<0.000000e+00> : vector<1x128xf32>
    %39 = tpu.matmul %37, %36, %cst_21 {dimension_numbers = #tpu.dot_dimension_numbers<[1], [0], [0], [1], [0, 0, 1, 1], [], []>} : vector<1x2xf32>, vector<2x128xf32>, vector<1x128xf32> -> vector<1x128xf32>
    %40 = vector.broadcast %38 : vector<1x1xf32> to vector<1x128xf32>
    %41 = arith.addf %39, %40 : vector<1x128xf32>
    %c0_22 = arith.constant 0 : index
    %c0_23 = arith.constant 0 : index
    %42 = vector.load %arg3[%c0_22, %c0_23] : memref<1x128xf32, #tpu.memory_space<vmem>>, vector<1x128xf32>
    tpu.vector_store %arg3[%c0_22, %c0_23], %41 {strides = array<i32>} : memref<1x128xf32, #tpu.memory_space<vmem>>, vector<1x128xf32>,
    return
  }
  func.func @transform_0(%arg0: i32) -> (i32, i32) {
    %c0_i32 = arith.constant 0 : i32
    %c0_i32_0 = arith.constant 0 : i32
    %c0_i32_1 = arith.constant 0 : i32
    return %c0_i32, %c0_i32_0 : i32, i32
  }
  func.func @transform_1(%arg0: i32) -> (i32, i32) {
    %c0_i32 = arith.constant 0 : i32
    %c0_i32_0 = arith.constant 0 : i32
    return %arg0, %c0_i32 : i32, i32
  }
  func.func @transform_2(%arg0: i32) -> (i32, i32) {
    %c0_i32 = arith.constant 0 : i32
    %c0_i32_0 = arith.constant 0 : i32
    return %c0_i32, %arg0 : i32, i32
  }
}

</mosaic_0001>

<bundles_post_ra>
// kernel: tpu_custom_call.1
= control target key start
LH: loop header
LB: loop body
LE: loop exit
PB: predicated region body
PF: predicated region fallthrough
CT: control target
= control target key end

     0   :  { %vm40_vm0 = vcmask 31744   ;;  %s421_s0 = inlined_call_operand.vmem [shape: f32[40,11], index: 0, kind: input, shape index: {}]   ;;  %s422_s1 = inlined_call_operand.vmem [shape: f32[128,4], index: 1, kind: input, shape index: {}]   ;;  %s423_s2 = inlined_call_operand.hbm [shape: f32[1,128], index: 2, kind: output, shape index: {}]  }
   0x1   :  { %v27_v0 = vld [vmem:[%s422_s1 + $0x78] sm:$0xff]  ;;  %v26_v1 = vld [vmem:[%s422_s1 + $0x70] sm:$0xff] }
   0x2   :  { %247 = vmatpush.xpose.msk.msra.mxu0 %vm40_vm0, %v27_v0 }
   0x3   :  { %7 = vsyncpa [#allocation3], 0  ;;  %v25_v2 = vld [vmem:[%s422_s1 + $0x68] sm:$0xff]  ;;  %v24_v3 = vld [vmem:[%s422_s1 + $0x60] sm:$0xff]  ;;  %v315_v10 = vmov 4   ;;  %v316_v21 = vmov 10  }
   0x4   :  { %v23_v4 = vld [vmem:[%s422_s1 + $0x58] sm:$0xff]  ;;  %v22_v5 = vld [vmem:[%s422_s1 + $0x50] sm:$0xff]  ;;  %v21_v6 = vld [vmem:[%s422_s1 + $0x48] sm:$0xff]  ;;  %276 = vset.pattern.permute.xlu0 %v315_v10  ;;  %277 = vset.pattern.permute.xlu1 %v316_v21  ;;  %vm133_vm1 = vcmask 1041408   ;;  %vm130_vm2 = vcmask 80896   ;;  %v317_v36 = vmov 5  }
   0x5   :  { %v20_v7 = vld [vmem:[%s422_s1 + $0x40] sm:$0xff]  ;;  %v19_v8 = vld [vmem:[%s422_s1 + $0x38] sm:$0xff]  ;;  %v29_v9 = vld [vmem:[%s421_s0 + $0x8] sm:$0x3]  ;;  %vm170_vm3 = vcmask 1044480   ;;  %vm167_vm4 = vcmask 39936  }
   0x6   :  { %248 = vmatpush.xpose.msk.msra.mxu0 %vm40_vm0, %v26_v1  ;;  %v18_v11 = vld [vmem:[%s422_s1 + $0x30] sm:$0xff]  ;;  %37 = vperm.xlu0 %276, %v29_v9   ;;  %v17_v12 = vld [vmem:[%s422_s1 + $0x28] sm:$0xff]  ;;  %v28_v13 = vld [vmem:[%s421_s0] sm:$0xff]  ;;  %v318_v45 = vmov 2   ;;  %vm204_vm5 = vcmask 15360   ;;  %s319_s22 = smov [#allocation2]  }
   0x7   :  { %v16_v14 = vld [vmem:[%s422_s1 + $0x20] sm:$0xff]  ;;  %v15_v15 = vld [vmem:[%s422_s1 + $0x18] sm:$0xff]  ;;  %v14_v16 = vld [vmem:[%s422_s1 + $0x10] sm:$0xff]  ;;  %279 = vset.pattern.permute.xlu2 %v318_v45  ;;  %s236_s23 = sshll.u32 %s319_s22, 4  ;;  %s238_s25 = sshll.u32 %s423_s2, 4  ;;  %s237_s23 = int_to_ptr.vmem [resolvable:$true] %s236_s23  ;;  %s239_s25 = int_to_ptr.hbm [resolvable:$true] %s238_s25 }
   0x8   :  { %v13_v17 = vld [vmem:[%s422_s1 + $0x8] sm:$0xff]  ;;  %v12_v18 = vld [vmem:[%s422_s1] sm:$0xff]  ;;  %v124_v20 = vld [vmem:[%s421_s0 + $0x10] sm:$0x1f] }
   0x9   :  { %127 = vperm.xlu1 %277, %v124_v20   ;;  %v161_v35 = vld [vmem:[%s421_s0 + $0x18] sm:$0x3]  ;;  %v198_v44 = vld [vmem:[%s421_s0 + $0x20] sm:$0x1] }
   0xa   :  { %249 = vmatpush.xpose.msk.msra.mxu0 %vm40_vm0, %v25_v2  ;;  %201 = vperm.xlu2 %279, %v198_v44  }
   0xe   :  { %250 = vmatpush.xpose.msk.msra.mxu0 %vm40_vm0, %v24_v3  ;;  %32 = vperm.xlu0 %276, %v28_v13  }
  0x11   :  { %278 = vset.pattern.permute.xlu1 %v317_v36 }
  0x12   :  { %251 = vmatpush.xpose.msk.msra.mxu0 %vm40_vm0, %v23_v4  ;;  %164 = vperm.xlu1 %278, %v161_v35  }
  0x16   :  { %252 = vmatpush.xpose.msk.msra.mxu0 %vm40_vm0, %v22_v5  ;;  %280 = vset.pattern.permute.xlu0 %v318_v45 }
  0x1a   :  { %253 = vmatpush.xpose.msk.msra.mxu0 %vm40_vm0, %v21_v6 }
  0x1e   :  { %254 = vmatpush.xpose.msk.msra.mxu0 %vm40_vm0, %v20_v7 }
  0x22   :  { %255 = vmatpush.xpose.msk.msra.mxu0 %vm40_vm0, %v19_v8 }
  0x26   :  { %256 = vmatpush.xpose.msk.msra.mxu0 %vm40_vm0, %v18_v11 }
  0x2a   :  { %257 = vmatpush.xpose.msk.msra.mxu0 %vm40_vm0, %v17_v12 }
  0x2e   :  { %258 = vmatpush.xpose.msk.msra.mxu0 %vm40_vm0, %v16_v14 }
  0x32   :  { %259 = vmatpush.xpose.msk.msra.mxu0 %vm40_vm0, %v15_v15 }
  0x36   :  { %260 = vmatpush.xpose.msk.msra.mxu0 %vm40_vm0, %v14_v16 }
  0x3a   :  { %261 = vmatpush.xpose.msk.msra.mxu0 %vm40_vm0, %v13_v17 }
  0x3e   :  { %262 = vmatpush.xpose.msk.msra.mxu0 %vm40_vm0, %v12_v18 }
  0x41   :  { %263 = vmatmul.msk.f32.vlgmr.msra.gmra.mxu0 %vm40_vm0, %v28_v13 }
  0x49   :  { %264 = vmatmul.msk.f32.gmra.mxu0 %vm40_vm0, %v29_v9 }
  0x64   :  { %v202_v53 = vpop.permute.xlu2 %201 }
  0x78   :  { %v38_v19 = vpop.permute.xlu0 %37 }
  0x7b   :  { %v128_v37 = vpop.permute.xlu1 %127 }
  0x80   :  { %v33_v22 = vpop.permute.xlu0 %32 }
  0x84   :  { %v165_v46 = vpop.permute.xlu1 %164 }
  0xbe   :  { %v110_v23 = vpop.f32.mrf.mxu0 }
  0xbf   :  { %v111_v24 = vadd.f32 %v110_v23, %v33_v22 }
  0xc1   :  { %v116_v25 = vmul.f32 0.5, %v111_v24 }
  0xc3   :  { %281 = vtanh.f32 %v116_v25 }
  0xc6   :  { %v113_v26 = vpop.f32.mrf.mxu0 }
  0xc7   :  { %v114_v27 = vadd.f32 %v113_v26, %v38_v19 }
  0xc9   :  { %v117_v28 = vmul.f32 0.5, %v114_v27  ;;  %v282_v29 = vpop.eup %281 }
  0xca   :  { %v120_v32 = vmul.f32 0.5, %v282_v29 }
  0xcb   :  { %283 = vtanh.f32 %v117_v28 }
  0xcc   :  { %v122_v34 = vadd.f32 0.5, %v120_v32 }
  0xd1   :  { %v284_v30 = vpop.eup %283 }
  0xd2   :  { %v121_v31 = vmul.f32 0.5, %v284_v30 }
  0xd4   :  { %v123_v33 = vadd.f32 0.5, %v121_v31 }
  0xd6   :  { %265 = vmatpush.msk.msra.mxu1 %vm133_vm1, %v123_v33 }
  0xd8   :  { %152 = vmatpush.msra.mxu1 %v122_v34 }
  0xd9   :  { %266 = vmatmul.msk.f32.vlgmr.msra.gmra.mxu1 %vm130_vm2, %v124_v20 }
 0x156   :  { %v154_v38 = vpop.f32.mrf.mxu1 }
 0x157   :  { %v155_v39 = vadd.f32 %v154_v38, %v128_v37 }
 0x159   :  { %v157_v40 = vmul.f32 0.5, %v155_v39 }
 0x15b   :  { %285 = vtanh.f32 %v157_v40 }
 0x161   :  { %v286_v41 = vpop.eup %285 }
 0x162   :  { %v159_v42 = vmul.f32 0.5, %v286_v41 }
 0x164   :  { %v160_v43 = vadd.f32 0.5, %v159_v42 }
 0x166   :  { %267 = vmatpush.msk.msra.mxu2 %vm170_vm3, %v160_v43 }
 0x167   :  { %268 = vmatmul.msk.f32.vlgmr.msra.gmra.mxu2 %vm167_vm4, %v161_v35 }
 0x1ea   :  { %v191_v47 = vpop.f32.mrf.mxu2 }
 0x1eb   :  { %v192_v48 = vadd.f32 %v191_v47, %v165_v46 }
 0x1ed   :  { %v194_v49 = vmul.f32 0.5, %v192_v48 }
 0x1ef   :  { %287 = vtanh.f32 %v194_v49 }
 0x1f5   :  { %v288_v50 = vpop.eup %287 }
 0x1f6   :  { %v196_v51 = vmul.f32 0.5, %v288_v50 }
 0x1f8   :  { %v197_v52 = vadd.f32 0.5, %v196_v51 }
 0x1fa   :  { %269 = vmatpush.msk.msra.mxu3 %vm133_vm1, %v197_v52 }
 0x1fb   :  { %270 = vmatmul.msk.f32.vlgmr.msra.gmra.mxu3 %vm204_vm5, %v198_v44 }
 0x27e   :  { %v227_v54 = vpop.f32.mrf.mxu3 }
 0x27f   :  { %v228_v55 = vadd.f32 %v227_v54, %v202_v53 }
 0x281   :  { %230 = vst [vmem:[#allocation2] sm:$0x1] %v228_v55 }
 0x282   :  { %241 = dma.vmem_to_hbm [thread:$0]  %s237_s23, 16, %s239_s25, [#allocation3]  }
 0x283   :  { %313 = dma.done.wait [#allocation3], 16  }
 0x284   :  { %314 = vsyncadd [#allocation3], 4294967280 }
 0x285   :  { %246 = vsyncpa [#allocation3], 1 }

</bundles_post_ra>
